<compile_context>
chip_gen: v7x
topology: tpu7x:2x2x1
jax: 0.10.0
libtpu: 0.0.40
codegen_flags: <defaults>
</compile_context>

<pallas_src>
import functools

import jax
import jax.numpy as jnp
from jax.experimental import pallas as pl
from jax.experimental.pallas import tpu as pltpu

LANES = 128


def _cdiv(a, b):
    return -(-a // b)


def _round_up(a, b):
    return _cdiv(a, b) * b


def _tpu_layout():
    """(num_parts, max_tile_rows) tuned per TPU generation."""
    try:
        kind = jax.devices()[0].device_kind.lower()
    except Exception:
        kind = ""
    # TODO(synk): on v7x verify in xprof that the leading "parallel" axis really
    # shards across both TensorCores; if not, switch to pltpu.CORE_PARALLEL.
    num_parts = 2 if "v7" in kind else 1            # 2 TCs only on v7x
    max_tile_rows = 8192 if "v6" in kind else 4096  # v5e scoped VMEM tightest
    return num_parts, max_tile_rows


def _row_align(*dtypes):
    """Sublane alignment (in rows) required by the narrowest streamed dtype."""
    align = 8
    for dt in dtypes:
        align = max(align, 32 // jnp.dtype(dt).itemsize)
    return align


def _prep(a):
    """Flatten; keep a narrow streamable dtype (upcast happens in-kernel)."""
    a = jnp.ravel(a)
    dt = a.dtype
    if dt in (jnp.dtype(jnp.float32), jnp.dtype(jnp.bfloat16)):
        return a
    if dt == jnp.dtype(jnp.bool_):
        return a.astype(jnp.int8)     # 1 B/elem, exact 0/1
    if dt == jnp.dtype(jnp.int8):
        return a
    return a.astype(jnp.float32)


def _sigmoid(x):
    # One EUP op (tanh) instead of exp + reciprocal.
    return 0.5 * (jnp.tanh(0.5 * x) + 1.0)


def _ft_partial_kernel(x_ref, t_ref, out_ref, tp_acc, p_acc, t_acc, *,
                       rows_valid, tile_rows, chunks_per_part, needs_mask):
    """Accumulates per-part partial sums of (p*t, p, t) into (8, 128) buffers.

    Grid = (num_parts, chunks_per_part).  Axis 0 is "parallel" (megacore),
    axis 1 is the sequential reduction.  Each step reduces its tile down to
    vreg-sized partials (pure VPU adds, no XLU); the cross-sublane reduce runs
    once per part in the finalize and the cross-lane reduce happens outside.
    """
    part = pl.program_id(0)
    j = pl.program_id(1)
    groups = tile_rows // 8

    @pl.when(j == 0)
    def _():
        tp_acc[...] = jnp.zeros_like(tp_acc)
        p_acc[...] = jnp.zeros_like(p_acc)
        t_acc[...] = jnp.zeros_like(t_acc)

    def accumulate(mask):
        x = x_ref[...].astype(jnp.float32)
        t = t_ref[...].astype(jnp.float32)
        p = _sigmoid(x)
        if mask is not None:
            # Select (not multiply) so garbage/NaN in the un-DMA'd edge-block
            # region can never leak into the sums.
            p = jnp.where(mask, p, 0.0)
            t = jnp.where(mask, t, 0.0)
        pt = p * t
        # In-step vreg-add reduction into (8, 128) accumulators: ~3 small
        # stores per step instead of 3 full-tile read-modify-writes.
        tp_acc[...] += jnp.sum(pt.reshape(groups, 8, LANES), axis=0)
        p_acc[...] += jnp.sum(p.reshape(groups, 8, LANES), axis=0)
        t_acc[...] += jnp.sum(t.reshape(groups, 8, LANES), axis=0)

    if not needs_mask:
        accumulate(None)
    else:
        full_blocks = rows_valid // tile_rows     # blocks with no invalid rows
        gb = part * chunks_per_part + j           # global block index

        @pl.when(gb < full_blocks)
        def _():
            accumulate(None)                      # hot path stays mask-free

        @pl.when(gb >= full_blocks)
        def _():
            rid = jax.lax.broadcasted_iota(jnp.int32, (tile_rows, LANES), 0)
            accumulate(gb * tile_rows + rid < rows_valid)

    @pl.when(j == chunks_per_part - 1)
    def _():
        # Cross-sublane reduce (XLU), once per part only.
        out_ref[:, 0:1, :] = jnp.sum(tp_acc[...], axis=0, keepdims=True)[None]
        out_ref[:, 1:2, :] = jnp.sum(p_acc[...], axis=0, keepdims=True)[None]
        out_ref[:, 2:3, :] = jnp.sum(t_acc[...], axis=0, keepdims=True)[None]


@jax.jit
def focal_tversky_loss(inputs, targets, smooth=1.0, alpha=0.5, beta=0.5,
                       gamma=2.0):
    """Matches FocalTverskyLossKernel.forward; returns a scalar f32."""
    x = _prep(inputs)
    t = _prep(targets)
    n = x.shape[0]

    num_parts, max_tile_rows = _tpu_layout()
    align = _row_align(x.dtype, t.dtype)

    rows = n // LANES                 # rows covered by the kernel
    n_main = rows * LANES             # 128-aligned prefix; tail -> epilogue

    tp = jnp.float32(0.0)
    sum_p = jnp.float32(0.0)
    sum_t = jnp.float32(0.0)

    if rows > 0:
        # Layout-preserving reshape of the aligned prefix (no pad copy).
        x2 = x[:n_main].reshape(rows, LANES)
        t2 = t[:n_main].reshape(rows, LANES)

        tile_rows = min(max_tile_rows,
                        _round_up(_cdiv(rows, num_parts), align))
        total_blocks = _cdiv(rows, tile_rows)     # blocks touching real data
        chunks_per_part = _cdiv(total_blocks, num_parts)
        covered_rows = num_parts * chunks_per_part * tile_rows
        needs_mask = covered_rows != rows         # static decision
        max_block = total_blocks - 1

        def in_map(p, j):
            # Clamp so a (fully masked) trailing block never indexes OOB.
            return (jnp.minimum(p * chunks_per_part + j, max_block), 0)

        kernel = functools.partial(
            _ft_partial_kernel,
            rows_valid=rows, tile_rows=tile_rows,
            chunks_per_part=chunks_per_part, needs_mask=needs_mask)

        # Double-buffered input footprint; v5e's default scoped VMEM limit is
        # only 16 MiB, so state the requirement explicitly with headroom.
        in_bytes = 2 * tile_rows * LANES * (x2.dtype.itemsize +
                                            t2.dtype.itemsize)
        vmem_limit = int(max(in_bytes + (4 << 20), 16 << 20))

        parts = pl.pallas_call(
            kernel,
            out_shape=jax.ShapeDtypeStruct((num_parts, 3, LANES), jnp.float32),
            grid_spec=pltpu.PrefetchScalarGridSpec(
                num_scalar_prefetch=0,
                grid=(num_parts, chunks_per_part),
                in_specs=[
                    pl.BlockSpec((tile_rows, LANES), in_map),
                    pl.BlockSpec((tile_rows, LANES), in_map),
                ],
                out_specs=pl.BlockSpec((1, 3, LANES), lambda p, j: (p, 0, 0)),
                scratch_shapes=[
                    pltpu.VMEM((8, LANES), jnp.float32),  # sum(p * t)
                    pltpu.VMEM((8, LANES), jnp.float32),  # sum(p)
                    pltpu.VMEM((8, LANES), jnp.float32),  # sum(t)
                ],
            ),
            compiler_params=pltpu.CompilerParams(
                dimension_semantics=("parallel", "arbitrary"),
                vmem_limit_bytes=vmem_limit,
            ),
        )(x2, t2)

        # Tiny epilogue on the (num_parts, 3, 128) lane-resident partials.
        sums = jnp.sum(parts, axis=(0, 2))
        tp, sum_p, sum_t = sums[0], sums[1], sums[2]

    if n_main != n:
        # Ragged (< 128 element) tail folded into the epilogue — no pad copy.
        x_tail = x[n_main:].astype(jnp.float32)
        t_tail = t[n_main:].astype(jnp.float32)
        p_tail = jax.nn.sigmoid(x_tail)
        tp = tp + jnp.sum(p_tail * t_tail)
        sum_p = sum_p + jnp.sum(p_tail)
        sum_t = sum_t + jnp.sum(t_tail)

    fp = sum_p - tp            # sum((1 - t) * p)
    fn = sum_t - tp            # sum(t * (1 - p))
    tversky = (tp + smooth) / (tp + alpha * fp + beta * fn + smooth)
    # Clamp: f32 rounding can push tversky slightly above 1 and a negative
    # base with non-integer gamma would produce NaN.
    return jnp.maximum(1.0 - tversky, 0.0) ** gamma


def focal_tversky_loss_ref(inputs, targets, smooth=1.0, alpha=0.5, beta=0.5,
                           gamma=2.0):
    p = jax.nn.sigmoid(inputs.astype(jnp.float32)).ravel()
    t = targets.astype(jnp.float32).ravel()
    tp = jnp.sum(p * t)
    fp = jnp.sum((1.0 - t) * p)
    fn = jnp.sum(t * (1.0 - p))
    tversky = (tp + smooth) / (tp + alpha * fp + beta * fn + smooth)
    return jnp.maximum(1.0 - tversky, 0.0) ** gamma


if __name__ == "__main__":
    key = jax.random.PRNGKey(0)
    k1, k2, k3, k4, k5, k6 = jax.random.split(key, 6)

    # NCHW logits and binary targets, as the PyTorch module expects.
    x = jax.random.normal(k1, (2, 4, 16, 16), dtype=jnp.float32)
    t = (jax.random.uniform(k2, (2, 4, 16, 16)) > 0.5).astype(jnp.float32)
    loss = jax.block_until_ready(focal_tversky_loss(x, t))
    ref = jax.block_until_ready(focal_tversky_loss_ref(x, t))
    assert jnp.allclose(loss, ref, rtol=1e-4, atol=1e-6), (loss, ref)

    # Ragged shape: exercises the masked edge block + tiny-tail epilogue
    # (no wrapper-side pad copy on this path anymore).
    x2 = jax.random.normal(k3, (2, 3, 7, 5), dtype=jnp.float32)
    t2 = (jax.random.uniform(k4, (2, 3, 7, 5)) > 0.5).astype(jnp.float32)
    loss2 = jax.block_until_ready(focal_tversky_loss(x2, t2))
    ref2 = jax.block_until_ready(focal_tversky_loss_ref(x2, t2))
    assert jnp.allclose(loss2, ref2, rtol=1e-4, atol=1e-6), (loss2, ref2)

    # bf16 logits streamed natively (half the HBM bytes of f32 inputs).
    x3 = jax.random.normal(k5, (2, 4, 32, 32), dtype=jnp.bfloat16)
    t3 = (jax.random.uniform(k6, (2, 4, 32, 32)) > 0.5).astype(jnp.float32)
    loss3 = jax.block_until_ready(focal_tversky_loss(x3, t3))
    ref3 = jax.block_until_ready(focal_tversky_loss_ref(x3, t3))
    assert jnp.allclose(loss3, ref3, rtol=1e-4, atol=1e-6), (loss3, ref3)

    print("KERNEL_OK")
</pallas_src>

<mosaic_0001>
module attributes {stable_mosaic.version = 11 : i64} {
  func.func @_ft_partial_kernel(%arg0: i32, %arg1: i32, %arg2: memref<16x128xf32, #tpu.memory_space<vmem>>, %arg3: memref<16x128xf32, #tpu.memory_space<vmem>>, %arg4: memref<1x3x128xf32, #tpu.memory_space<vmem>>, %arg5: memref<8x128xf32, #tpu.memory_space<vmem>>, %arg6: memref<8x128xf32, #tpu.memory_space<vmem>>, %arg7: memref<8x128xf32, #tpu.memory_space<vmem>>) attributes {dimension_semantics = [#tpu.dimension_semantics<parallel>, #tpu.dimension_semantics<arbitrary>], iteration_bounds = array<i64: 1, 1>, scalar_prefetch = 0 : i64, scratch_operands = 3 : i64, tpu.core_type = #tpu.core_type<tc>, window_params = [{transform_indices = @transform_0, window_bounds = array<i64: 16, 128>}, {transform_indices = @transform_1, window_bounds = array<i64: 16, 128>}, {transform_indices = @transform_2, window_bounds = array<i64: 1, 3, 128>}]} {
    %c0_i32 = arith.constant 0 : i32
    %0 = arith.cmpi eq, %arg1, %c0_i32 : i32
    %1 = arith.extui %0 : i1 to i32
    %c0_i32_0 = arith.constant 0 : i32
    %2 = arith.cmpi ne, %1, %c0_i32_0 : i32
    scf.if %2 {
      %cst_23 = arith.constant 0.000000e+00 : f32
      %31 = vector.broadcast %cst_23 : f32 to vector<8x128xf32>
      %c0_24 = arith.constant 0 : index
      %c0_25 = arith.constant 0 : index
      %32 = vector.load %arg5[%c0_24, %c0_25] : memref<8x128xf32, #tpu.memory_space<vmem>>, vector<8x128xf32>
      tpu.vector_store %arg5[%c0_24, %c0_25], %31 {strides = array<i32>} : memref<8x128xf32, #tpu.memory_space<vmem>>, vector<8x128xf32>,
      %cst_26 = arith.constant 0.000000e+00 : f32
      %33 = vector.broadcast %cst_26 : f32 to vector<8x128xf32>
      %c0_27 = arith.constant 0 : index
      %c0_28 = arith.constant 0 : index
      %34 = vector.load %arg6[%c0_27, %c0_28] : memref<8x128xf32, #tpu.memory_space<vmem>>, vector<8x128xf32>
      tpu.vector_store %arg6[%c0_27, %c0_28], %33 {strides = array<i32>} : memref<8x128xf32, #tpu.memory_space<vmem>>, vector<8x128xf32>,
      %cst_29 = arith.constant 0.000000e+00 : f32
      %35 = vector.broadcast %cst_29 : f32 to vector<8x128xf32>
      %c0_30 = arith.constant 0 : index
      %c0_31 = arith.constant 0 : index
      %36 = vector.load %arg7[%c0_30, %c0_31] : memref<8x128xf32, #tpu.memory_space<vmem>>, vector<8x128xf32>
      tpu.vector_store %arg7[%c0_30, %c0_31], %35 {strides = array<i32>} : memref<8x128xf32, #tpu.memory_space<vmem>>, vector<8x128xf32>,
    } else {
    }
    %c0 = arith.constant 0 : index
    %c0_1 = arith.constant 0 : index
    %3 = vector.load %arg2[%c0, %c0_1] : memref<16x128xf32, #tpu.memory_space<vmem>>, vector<16x128xf32>
    %c0_2 = arith.constant 0 : index
    %c0_3 = arith.constant 0 : index
    %4 = vector.load %arg3[%c0_2, %c0_3] : memref<16x128xf32, #tpu.memory_space<vmem>>, vector<16x128xf32>
    %cst = arith.constant 5.000000e-01 : f32
    %5 = vector.broadcast %cst : f32 to vector<16x128xf32>
    %6 = arith.mulf %5, %3 : vector<16x128xf32>
    %7 = math.tanh %6 : vector<16x128xf32>
    %cst_4 = arith.constant 1.000000e+00 : f32
    %8 = vector.broadcast %cst_4 : f32 to vector<16x128xf32>
    %9 = arith.addf %7, %8 : vector<16x128xf32>
    %cst_5 = arith.constant 5.000000e-01 : f32
    %10 = vector.broadcast %cst_5 : f32 to vector<16x128xf32>
    %11 = arith.mulf %10, %9 : vector<16x128xf32>
    %12 = arith.mulf %11, %4 : vector<16x128xf32>
    %c0_6 = arith.constant 0 : index
    %c0_7 = arith.constant 0 : index
    %13 = vector.load %arg5[%c0_6, %c0_7] : memref<8x128xf32, #tpu.memory_space<vmem>>, vector<8x128xf32>
    %14 = vector.shape_cast %12 : vector<16x128xf32> to vector<2x8x128xf32>
    %cst_8 = arith.constant dense<0.000000e+00> : vector<8x128xf32>
    %15 = vector.multi_reduction <add>, %14, %cst_8 [0] : vector<2x8x128xf32> to vector<8x128xf32>
    %16 = arith.addf %13, %15 : vector<8x128xf32>
    %c0_9 = arith.constant 0 : index
    %c0_10 = arith.constant 0 : index
    %17 = vector.load %arg5[%c0_9, %c0_10] : memref<8x128xf32, #tpu.memory_space<vmem>>, vector<8x128xf32>
    tpu.vector_store %arg5[%c0_9, %c0_10], %16 {strides = array<i32>} : memref<8x128xf32, #tpu.memory_space<vmem>>, vector<8x128xf32>,
    %c0_11 = arith.constant 0 : index
    %c0_12 = arith.constant 0 : index
    %18 = vector.load %arg6[%c0_11, %c0_12] : memref<8x128xf32, #tpu.memory_space<vmem>>, vector<8x128xf32>
    %19 = vector.shape_cast %11 : vector<16x128xf32> to vector<2x8x128xf32>
    %cst_13 = arith.constant dense<0.000000e+00> : vector<8x128xf32>
    %20 = vector.multi_reduction <add>, %19, %cst_13 [0] : vector<2x8x128xf32> to vector<8x128xf32>
    %21 = arith.addf %18, %20 : vector<8x128xf32>
    %c0_14 = arith.constant 0 : index
    %c0_15 = arith.constant 0 : index
    %22 = vector.load %arg6[%c0_14, %c0_15] : memref<8x128xf32, #tpu.memory_space<vmem>>, vector<8x128xf32>
    tpu.vector_store %arg6[%c0_14, %c0_15], %21 {strides = array<i32>} : memref<8x128xf32, #tpu.memory_space<vmem>>, vector<8x128xf32>,
    %c0_16 = arith.constant 0 : index
    %c0_17 = arith.constant 0 : index
    %23 = vector.load %arg7[%c0_16, %c0_17] : memref<8x128xf32, #tpu.memory_space<vmem>>, vector<8x128xf32>
    %24 = vector.shape_cast %4 : vector<16x128xf32> to vector<2x8x128xf32>
    %cst_18 = arith.constant dense<0.000000e+00> : vector<8x128xf32>
    %25 = vector.multi_reduction <add>, %24, %cst_18 [0] : vector<2x8x128xf32> to vector<8x128xf32>
    %26 = arith.addf %23, %25 : vector<8x128xf32>
    %c0_19 = arith.constant 0 : index
    %c0_20 = arith.constant 0 : index
    %27 = vector.load %arg7[%c0_19, %c0_20] : memref<8x128xf32, #tpu.memory_space<vmem>>, vector<8x128xf32>
    tpu.vector_store %arg7[%c0_19, %c0_20], %26 {strides = array<i32>} : memref<8x128xf32, #tpu.memory_space<vmem>>, vector<8x128xf32>,
    %c0_i32_21 = arith.constant 0 : i32
    %28 = arith.cmpi eq, %arg1, %c0_i32_21 : i32
    %29 = arith.extui %28 : i1 to i32
    %c0_i32_22 = arith.constant 0 : i32
    %30 = arith.cmpi ne, %29, %c0_i32_22 : i32
    scf.if %30 {
      %c0_23 = arith.constant 0 : index
      %c0_24 = arith.constant 0 : index
      %31 = vector.load %arg5[%c0_23, %c0_24] : memref<8x128xf32, #tpu.memory_space<vmem>>, vector<8x128xf32>
      %cst_25 = arith.constant dense<0.000000e+00> : vector<128xf32>
      %32 = vector.multi_reduction <add>, %31, %cst_25 [0] : vector<8x128xf32> to vector<128xf32>
      %33 = vector.shape_cast %32 : vector<128xf32> to vector<1x128xf32>
      %34 = vector.shape_cast %33 : vector<1x128xf32> to vector<1x1x128xf32>
      %c0_26 = arith.constant 0 : index
      %c0_27 = arith.constant 0 : index
      %c0_28 = arith.constant 0 : index
      %35 = vector.load %arg4[%c0_26, %c0_27, %c0_28] : memref<1x3x128xf32, #tpu.memory_space<vmem>>, vector<1x1x128xf32>
      tpu.vector_store %arg4[%c0_26, %c0_27, %c0_28], %34 {strides = array<i32>} : memref<1x3x128xf32, #tpu.memory_space<vmem>>, vector<1x1x128xf32>,
      %c0_29 = arith.constant 0 : index
      %c0_30 = arith.constant 0 : index
      %36 = vector.load %arg6[%c0_29, %c0_30] : memref<8x128xf32, #tpu.memory_space<vmem>>, vector<8x128xf32>
      %cst_31 = arith.constant dense<0.000000e+00> : vector<128xf32>
      %37 = vector.multi_reduction <add>, %36, %cst_31 [0] : vector<8x128xf32> to vector<128xf32>
      %38 = vector.shape_cast %37 : vector<128xf32> to vector<1x128xf32>
      %39 = vector.shape_cast %38 : vector<1x128xf32> to vector<1x1x128xf32>
      %c0_32 = arith.constant 0 : index
      %c1 = arith.constant 1 : index
      %c0_33 = arith.constant 0 : index
      %40 = vector.load %arg4[%c0_32, %c1, %c0_33] : memref<1x3x128xf32, #tpu.memory_space<vmem>>, vector<1x1x128xf32>
      tpu.vector_store %arg4[%c0_32, %c1, %c0_33], %39 {strides = array<i32>} : memref<1x3x128xf32, #tpu.memory_space<vmem>>, vector<1x1x128xf32>,
      %c0_34 = arith.constant 0 : index
      %c0_35 = arith.constant 0 : index
      %41 = vector.load %arg7[%c0_34, %c0_35] : memref<8x128xf32, #tpu.memory_space<vmem>>, vector<8x128xf32>
      %cst_36 = arith.constant dense<0.000000e+00> : vector<128xf32>
      %42 = vector.multi_reduction <add>, %41, %cst_36 [0] : vector<8x128xf32> to vector<128xf32>
      %43 = vector.shape_cast %42 : vector<128xf32> to vector<1x128xf32>
      %44 = vector.shape_cast %43 : vector<1x128xf32> to vector<1x1x128xf32>
      %c0_37 = arith.constant 0 : index
      %c2 = arith.constant 2 : index
      %c0_38 = arith.constant 0 : index
      %45 = vector.load %arg4[%c0_37, %c2, %c0_38] : memref<1x3x128xf32, #tpu.memory_space<vmem>>, vector<1x1x128xf32>
      tpu.vector_store %arg4[%c0_37, %c2, %c0_38], %44 {strides = array<i32>} : memref<1x3x128xf32, #tpu.memory_space<vmem>>, vector<1x1x128xf32>,
    } else {
    }
    return
  }
  func.func @transform_0(%arg0: i32, %arg1: i32) -> (i32, i32) {
    %c1_i32 = arith.constant 1 : i32
    %0 = arith.muli %arg0, %c1_i32 : i32
    %1 = arith.addi %0, %arg1 : i32
    %c0_i32 = arith.constant 0 : i32
    %2 = arith.minsi %1, %c0_i32 : i32
    %c0_i32_0 = arith.constant 0 : i32
    %c0_i32_1 = arith.constant 0 : i32
    return %2, %c0_i32_0 : i32, i32
  }
  func.func @transform_1(%arg0: i32, %arg1: i32) -> (i32, i32) {
    %c1_i32 = arith.constant 1 : i32
    %0 = arith.muli %arg0, %c1_i32 : i32
    %1 = arith.addi %0, %arg1 : i32
    %c0_i32 = arith.constant 0 : i32
    %2 = arith.minsi %1, %c0_i32 : i32
    %c0_i32_0 = arith.constant 0 : i32
    %c0_i32_1 = arith.constant 0 : i32
    return %2, %c0_i32_0 : i32, i32
  }
  func.func @transform_2(%arg0: i32, %arg1: i32) -> (i32, i32, i32) {
    %c0_i32 = arith.constant 0 : i32
    %c0_i32_0 = arith.constant 0 : i32
    %c0_i32_1 = arith.constant 0 : i32
    return %arg0, %c0_i32, %c0_i32_0 : i32, i32, i32
  }
}

</mosaic_0001>

<bundles_post_ra>
// kernel: focal_tversky_loss.1
= control target key start
LH: loop header
LB: loop body
LE: loop exit
PB: predicated region body
PF: predicated region fallthrough
CT: control target
= control target key end

     0   :  { %s191_s0 = inlined_call_operand.vmem [shape: f32[16,128], index: 0, kind: input, shape index: {}]   ;;  %s192_s1 = inlined_call_operand.vmem [shape: f32[16,128], index: 1, kind: input, shape index: {}]   ;;  %s193_s2 = inlined_call_operand.vmem [shape: f32[1,3,128], index: 2, kind: output, shape index: {}]  }
   0x1   :  { %v82_v0 = vld [vmem:[%s191_s0] sm:$0xff]  ;;  %v83_v1 = vld [vmem:[%s191_s0 + $0x8] sm:$0xff] }
   0x2   :  { %v84_v2 = vld [vmem:[%s192_s1] sm:$0xff]  ;;  %v85_v3 = vld [vmem:[%s192_s1 + $0x8] sm:$0xff]  ;;  %v86_v4 = vmul.f32 0.5, %v82_v0  ;;  %v87_v5 = vmul.f32 0.5, %v83_v1 }
   0x3   :  { %v105_v6 = vadd.f32 %v85_v3, %v84_v2 }
   0x4   :  { %151 = vtanh.f32 %v86_v4 }
   0x5   :  { %153 = vtanh.f32 %v87_v5  ;;  %v128_v7 = vrot.slane %v105_v6, 4 }
   0x7   :  { %v129_v8 = vadd.f32 %v128_v7, %v105_v6 }
   0x9   :  { %v130_v9 = vrot.slane %v129_v8, 2 }
   0xb   :  { %v131_v10 = vadd.f32 %v130_v9, %v129_v8 }
   0xd   :  { %v132_v11 = vrot.slane %v131_v10, 1 }
   0xe   :  { %v152_v12 = vpop.eup %151 }
   0xf   :  { %v154_v13 = vpop.eup %153  ;;  %v90_v14 = vadd.f32 1.0, %v152_v12  ;;  %v133_v15 = vadd.f32 %v132_v11, %v131_v10 }
  0x10   :  { %v91_v16 = vadd.f32 1.0, %v154_v13 }
  0x11   :  { %v92_v17 = vmul.f32 0.5, %v90_v14  ;;  %134 = vst [vmem:[%s193_s2 + $0x2] sm:$0x1] %v133_v15 }
  0x12   :  { %v93_v18 = vmul.f32 0.5, %v91_v16 }
  0x13   :  { %v94_v19 = vmul.f32 %v92_v17, %v84_v2 }
  0x14   :  { %v95_v20 = vmul.f32 %v93_v18, %v85_v3  ;;  %v101_v21 = vadd.f32 %v93_v18, %v92_v17 }
  0x16   :  { %v97_v22 = vadd.f32 %v95_v20, %v94_v19  ;;  %v120_v23 = vrot.slane %v101_v21, 4 }
  0x18   :  { %v112_v24 = vrot.slane %v97_v22, 4  ;;  %v121_v25 = vadd.f32 %v120_v23, %v101_v21 }
  0x1a   :  { %v113_v26 = vadd.f32 %v112_v24, %v97_v22  ;;  %v122_v27 = vrot.slane %v121_v25, 2 }
  0x1c   :  { %v114_v28 = vrot.slane %v113_v26, 2  ;;  %v123_v29 = vadd.f32 %v122_v27, %v121_v25 }
  0x1e   :  { %v115_v30 = vadd.f32 %v114_v28, %v113_v26  ;;  %v124_v31 = vrot.slane %v123_v29, 1 }
  0x20   :  { %v116_v32 = vrot.slane %v115_v30, 1  ;;  %v125_v33 = vadd.f32 %v124_v31, %v123_v29 }
  0x22   :  { %v117_v34 = vadd.f32 %v116_v32, %v115_v30  ;;  %126 = vst [vmem:[%s193_s2 + $0x1] sm:$0x1] %v125_v33 }
  0x24   :  { %118 = vst [vmem:[%s193_s2] sm:$0x1] %v117_v34 }

</bundles_post_ra>
